<compile_context>
chip_gen: v5e
topology: v5e:2x2
jax: 0.10.0
libtpu: 0.0.40
codegen_flags: <defaults>
</compile_context>

<pallas_src>
import functools

import numpy as np
import jax
import jax.numpy as jnp
from jax.experimental import pallas as pl
from jax.experimental.pallas import tpu as pltpu

BN_EPS = 1e-5  # torch BatchNorm1d default eps


def _ghost_batch_norm(z, gamma, beta, chunk):
    """Training-mode Ghost BatchNorm (torch.chunk semantics), folded to scale/shift.

    One-pass statistics (sum + sum-of-squares), then per-chunk
        scale = gamma * rsqrt(var + eps),  shift = beta - mean * scale
    applied as a single z*scale + shift pass over the big tensor.
    # TODO(synk): running_mean/running_var momentum updates are a training-time
    # buffer side effect that does not change the forward output; not modeled here.
    """
    rows, feat = z.shape
    n_chunks = -(-rows // chunk)  # ceil
    if n_chunks == 1:
        inv = 1.0 / rows
        s = jnp.sum(z, axis=0, keepdims=True)
        sq = jnp.sum(z * z, axis=0, keepdims=True)
        mean = s * inv
        var = sq * inv - mean * mean
        scale = gamma * jax.lax.rsqrt(var + BN_EPS)
        shift = beta - mean * scale
        return z * scale + shift

    padded_rows = n_chunks * chunk
    # Masked vectorized path: zero-pad to a whole number of chunks, reduce per chunk,
    # and divide by the true per-chunk counts (zeros contribute nothing to the sums).
    z_p = z if padded_rows == rows else jnp.pad(z, ((0, padded_rows - rows), (0, 0)))
    zc = z_p.reshape(n_chunks, chunk, feat)
    s = jnp.sum(zc, axis=1, keepdims=True)
    sq = jnp.sum(zc * zc, axis=1, keepdims=True)
    if padded_rows == rows:
        inv = jnp.float32(1.0 / chunk)
    else:
        idx = jax.lax.broadcasted_iota(jnp.int32, (n_chunks, 1, 1), 0)
        last = rows - (n_chunks - 1) * chunk
        counts = jnp.where(idx == n_chunks - 1, jnp.float32(last), jnp.float32(chunk))
        inv = 1.0 / counts
    mean = s * inv
    var = sq * inv - mean * mean
    scale = gamma * jax.lax.rsqrt(var + BN_EPS)   # (1, feat) bcast to (n_chunks,1,feat)
    shift = beta - mean * scale
    out = (zc * scale + shift).reshape(padded_rows, feat)
    return out if padded_rows == rows else out[:rows]


def _glu_kernel(x_ref, w_ref, gamma_ref, beta_ref, out_ref, *, chunk, out_dim, c_pad):
    # One fused matmul over both GLU halves; f32 accumulation regardless of operand
    # dtype.  RHS is 2*c_pad lanes wide (fills a 256-wide v6e/v7x MXU pass).
    z = jnp.dot(x_ref[...], w_ref[...], preferred_element_type=jnp.float32)
    # Per-channel BN stats, so normalizing both halves together is exact.
    z = _ghost_batch_norm(z, gamma_ref[...], beta_ref[...], chunk)
    # Split at the 128-aligned lane boundary (free vreg selection); sigmoid -> EUP.
    y = z[:, :c_pad] * jax.nn.sigmoid(z[:, c_pad:])
    if out_dim != c_pad:
        # Store only the real columns (masked vst) instead of a padded HBM write
        # followed by an external slice pass.
        y = y[:, :out_dim]
    out_ref[...] = y.astype(out_ref.dtype)


def _pick_batch_tile(B, chunk):
    """Default batch tile: ghost-chunk & 8 aligned, ~256-2048 rows, >= 2 grid steps."""
    if B % chunk != 0 or chunk % 8 != 0 or B <= max(2 * chunk, 256):
        return B
    candidates = [k * chunk for k in range(1, B // chunk) if B % (k * chunk) == 0]
    in_range = [t for t in candidates if 256 <= t <= 2048]
    if in_range:
        return min(in_range, key=lambda t: (abs(t - 512), -t))
    return max(candidates) if candidates else B


def glu_layer(x, fc_weight, bn_gamma, bn_beta, *, virtual_batch_size=128,
              batch_tile=None, cast_operands_to_bf16=False):
    """Pallas forward of GLU_Layer: Linear(no bias) -> GBN (train mode) -> GLU.

    x:         (B, in_dim)           float32
    fc_weight: (2*out_dim, in_dim)   PyTorch nn.Linear weight layout
    bn_gamma:  (2*out_dim,)          BatchNorm1d weight
    bn_beta:   (2*out_dim,)          BatchNorm1d bias
    """
    B, in_dim = x.shape
    out_dim = fc_weight.shape[0] // 2

    # Ghost-chunk geometry (torch.chunk over the full batch).
    n_chunks = int(np.ceil(B / virtual_batch_size))
    chunk = int(np.ceil(B / n_chunks))

    # Batch tiling: >=2 "parallel" grid steps when shapes allow (DMA/compute overlap,
    # v7x dual-TC).  Tiles must align to ghost-chunk boundaries so per-chunk BN stats
    # stay tile-local (exact torch semantics).
    if batch_tile is None:
        batch_tile = _pick_batch_tile(B, chunk)
    batch_tile = min(int(batch_tile), B)
    if batch_tile != B:
        assert (B % batch_tile == 0 and batch_tile % chunk == 0
                and batch_tile % 8 == 0), (
            "batch_tile must divide B and be a multiple of the ghost-chunk size and 8")
    num_tiles = B // batch_tile

    # Pad each GLU half's output channels to a multiple of 128 lanes, then fuse the
    # halves back into a single (in_dim, 2*c_pad) weight so the kernel does ONE matmul
    # and splits z at a 128-aligned lane boundary.  Padded columns have zero
    # weight/gamma/beta (no NaNs: var=0 -> rsqrt(eps)) and are never stored.
    c_pad = max(128, ((out_dim + 127) // 128) * 128)
    pad = c_pad - out_dim
    w_lin = fc_weight[:out_dim, :].T
    w_gate = fc_weight[out_dim:, :].T
    if pad:
        w_lin = jnp.pad(w_lin, ((0, 0), (0, pad)))
        w_gate = jnp.pad(w_gate, ((0, 0), (0, pad)))
        g_lin = jnp.pad(bn_gamma[:out_dim], (0, pad))
        g_gate = jnp.pad(bn_gamma[out_dim:], (0, pad))
        b_lin = jnp.pad(bn_beta[:out_dim], (0, pad))
        b_gate = jnp.pad(bn_beta[out_dim:], (0, pad))
    else:
        g_lin, g_gate = bn_gamma[:out_dim], bn_gamma[out_dim:]
        b_lin, b_gate = bn_beta[:out_dim], bn_beta[out_dim:]
    w = jnp.concatenate([w_lin, w_gate], axis=1)                       # (in_dim, 2*c_pad)
    gamma = jnp.concatenate([g_lin, g_gate]).reshape(1, 2 * c_pad).astype(jnp.float32)
    beta = jnp.concatenate([b_lin, b_gate]).reshape(1, 2 * c_pad).astype(jnp.float32)

    # Optional bf16 MXU operands (v5e/v6e: halves x HBM bytes in a mem-bound kernel,
    # native MXU dtype).  Accumulation and all BN/GLU math stay f32.
    op_dtype = jnp.bfloat16 if cast_operands_to_bf16 else jnp.float32
    x_in = x.astype(op_dtype)
    w = w.astype(op_dtype)

    # Scoped-VMEM budget sized to the tile (capped at v7x's 64 MiB physical VMEM).
    tile_bytes = (
        2 * batch_tile * in_dim * x_in.dtype.itemsize      # x tile, double-buffered
        + 2 * in_dim * 2 * c_pad * w.dtype.itemsize        # weight (index-invariant)
        + 4 * 2 * c_pad * 4                                # gamma / beta
        + 2 * batch_tile * out_dim * 4                     # output tile, double-buffered
        + 8 * batch_tile * c_pad * 4                       # z / y / BN temporaries
    )
    vmem_limit = int(min(64 * 2**20, max(16 * 2**20, 2 * tile_bytes)))

    kernel = functools.partial(_glu_kernel, chunk=chunk, out_dim=out_dim, c_pad=c_pad)
    const = lambda i: (0, 0)  # weight / BN params stay VMEM-resident across tiles
    # TODO(synk): pipeline_mode=pl.Buffered(1) on the three invariant specs would
    # reclaim their second VMEM buffer (~tens of KiB here); skipped to avoid relying
    # on pipeline_mode support in the top-level pallas_call pipeline.
    out = pl.pallas_call(
        kernel,
        out_shape=jax.ShapeDtypeStruct((B, out_dim), jnp.float32),
        grid=(num_tiles,),
        in_specs=[
            pl.BlockSpec((batch_tile, in_dim), lambda i: (i, 0)),   # x batch tile
            pl.BlockSpec((in_dim, 2 * c_pad), const),               # fused W
            pl.BlockSpec((1, 2 * c_pad), const),                    # gamma
            pl.BlockSpec((1, 2 * c_pad), const),                    # beta
        ],
        out_specs=pl.BlockSpec((batch_tile, out_dim), lambda i: (i, 0)),
        compiler_params=pltpu.CompilerParams(
            dimension_semantics=("parallel",),
            vmem_limit_bytes=vmem_limit),
    )(x_in, w, gamma, beta)
    return out


def glu_layer_ref(x, fc_weight, bn_gamma, bn_beta, *, virtual_batch_size=128):
    """Independent pure-JAX reference mirroring the PyTorch forward (training mode)."""
    B = x.shape[0]
    out_dim = fc_weight.shape[0] // 2
    n_chunks = int(np.ceil(B / virtual_batch_size))
    chunk = int(np.ceil(B / n_chunks))
    z = x @ fc_weight.T
    outs = []
    for c in range(n_chunks):                       # torch.chunk semantics
        zc = z[c * chunk:min(B, (c + 1) * chunk)]
        mean = jnp.mean(zc, axis=0, keepdims=True)
        var = jnp.mean((zc - mean) ** 2, axis=0, keepdims=True)
        outs.append((zc - mean) * jax.lax.rsqrt(var + BN_EPS) * bn_gamma + bn_beta)
    z = jnp.concatenate(outs, axis=0)
    return z[:, :out_dim] * jax.nn.sigmoid(z[:, out_dim:])


if __name__ == "__main__":
    in_dim, out_dim, vbs = 32, 16, 128
    key = jax.random.PRNGKey(0)
    kw, kg, kb, k0, k1, k2 = jax.random.split(key, 6)

    # xavier_normal_ init with the gain used by initialize_glu.
    gain = np.sqrt((in_dim + 2 * out_dim) / np.sqrt(in_dim))
    std = np.float32(gain * np.sqrt(2.0 / (in_dim + 2 * out_dim)))
    fc_weight = std * jax.random.normal(kw, (2 * out_dim, in_dim), jnp.float32)

    # Non-trivial BatchNorm1d affine params.
    bn_gamma = 1.0 + 0.1 * jax.random.normal(kg, (2 * out_dim,), jnp.float32)
    bn_beta = 0.1 * jax.random.normal(kb, (2 * out_dim,), jnp.float32)

    def check(x, tol, **kwargs):
        out = jax.block_until_ready(
            glu_layer(x, fc_weight, bn_gamma, bn_beta, virtual_batch_size=vbs, **kwargs))
        ref = glu_layer_ref(x, fc_weight, bn_gamma, bn_beta, virtual_batch_size=vbs)
        np.testing.assert_allclose(np.asarray(out), np.asarray(ref), rtol=tol, atol=tol)

    # Case 1: B < virtual batch -> single ghost chunk, single-tile grid.
    check(jax.random.normal(k0, (64, in_dim), jnp.float32), 5e-4)
    # Case 2: B=256 -> two ghost chunks, one tile (vectorized GBN).
    check(jax.random.normal(k1, (256, in_dim), jnp.float32), 5e-4)
    # Case 3: B=512 -> default tiling picks 256-row tiles -> 2 "parallel" grid steps.
    check(jax.random.normal(k2, (512, in_dim), jnp.float32), 5e-4)
    # Case 4: bf16 matmul operands (v5e/v6e path); looser tolerance for bf16 rounding.
    check(jax.random.normal(k2, (512, in_dim), jnp.float32), 5e-2,
          cast_operands_to_bf16=True)

    print("KERNEL_OK")
</pallas_src>

<mosaic_0001>
module attributes {stable_mosaic.version = 11 : i64} {
  func.func @_glu_kernel(%arg0: i32, %arg1: memref<64x32xf32, #tpu.memory_space<vmem>>, %arg2: memref<32x256xf32, #tpu.memory_space<vmem>>, %arg3: memref<1x256xf32, #tpu.memory_space<vmem>>, %arg4: memref<1x256xf32, #tpu.memory_space<vmem>>, %arg5: memref<64x16xf32, #tpu.memory_space<vmem>>) attributes {dimension_semantics = [#tpu.dimension_semantics<parallel>], iteration_bounds = array<i64: 1>, scalar_prefetch = 0 : i64, scratch_operands = 0 : i64, tpu.core_type = #tpu.core_type<tc>, window_params = [{transform_indices = @transform_0, window_bounds = array<i64: 64, 32>}, {pipeline_mode = #tpu.pipeline_mode<synchronous>, transform_indices = @transform_1, window_bounds = array<i64: 32, 256>}, {pipeline_mode = #tpu.pipeline_mode<synchronous>, transform_indices = @transform_2, window_bounds = array<i64: 1, 256>}, {pipeline_mode = #tpu.pipeline_mode<synchronous>, transform_indices = @transform_3, window_bounds = array<i64: 1, 256>}, {transform_indices = @transform_4, window_bounds = array<i64: 64, 16>}]} {
    %c0 = arith.constant 0 : index
    %c0_0 = arith.constant 0 : index
    %0 = vector.load %arg1[%c0, %c0_0] : memref<64x32xf32, #tpu.memory_space<vmem>>, vector<64x32xf32>
    %c0_1 = arith.constant 0 : index
    %c0_2 = arith.constant 0 : index
    %1 = vector.load %arg2[%c0_1, %c0_2] : memref<32x256xf32, #tpu.memory_space<vmem>>, vector<32x256xf32>
    %cst = arith.constant dense<0.000000e+00> : vector<64x256xf32>
    %2 = tpu.matmul %0, %1, %cst {dimension_numbers = #tpu.dot_dimension_numbers<[1], [0], [0], [1], [0, 0, 1, 1], [], []>} : vector<64x32xf32>, vector<32x256xf32>, vector<64x256xf32> -> vector<64x256xf32>
    %c0_3 = arith.constant 0 : index
    %c0_4 = arith.constant 0 : index
    %3 = vector.load %arg3[%c0_3, %c0_4] : memref<1x256xf32, #tpu.memory_space<vmem>>, vector<1x256xf32>
    %c0_5 = arith.constant 0 : index
    %c0_6 = arith.constant 0 : index
    %4 = vector.load %arg4[%c0_5, %c0_6] : memref<1x256xf32, #tpu.memory_space<vmem>>, vector<1x256xf32>
    %cst_7 = arith.constant dense<0.000000e+00> : vector<256xf32>
    %5 = vector.multi_reduction <add>, %2, %cst_7 [0] : vector<64x256xf32> to vector<256xf32>
    %6 = vector.shape_cast %5 : vector<256xf32> to vector<1x256xf32>
    %7 = arith.mulf %2, %2 : vector<64x256xf32>
    %cst_8 = arith.constant dense<0.000000e+00> : vector<256xf32>
    %8 = vector.multi_reduction <add>, %7, %cst_8 [0] : vector<64x256xf32> to vector<256xf32>
    %9 = vector.shape_cast %8 : vector<256xf32> to vector<1x256xf32>
    %cst_9 = arith.constant 1.562500e-02 : f32
    %10 = vector.broadcast %cst_9 : f32 to vector<1x256xf32>
    %11 = arith.mulf %6, %10 : vector<1x256xf32>
    %cst_10 = arith.constant 1.562500e-02 : f32
    %12 = vector.broadcast %cst_10 : f32 to vector<1x256xf32>
    %13 = arith.mulf %9, %12 : vector<1x256xf32>
    %14 = arith.mulf %11, %11 : vector<1x256xf32>
    %15 = arith.subf %13, %14 : vector<1x256xf32>
    %cst_11 = arith.constant 9.99999974E-6 : f32
    %16 = vector.broadcast %cst_11 : f32 to vector<1x256xf32>
    %17 = arith.addf %15, %16 : vector<1x256xf32>
    %18 = math.rsqrt %17 : vector<1x256xf32>
    %19 = arith.mulf %3, %18 : vector<1x256xf32>
    %20 = arith.mulf %11, %19 : vector<1x256xf32>
    %21 = arith.subf %4, %20 : vector<1x256xf32>
    %22 = vector.broadcast %19 : vector<1x256xf32> to vector<64x256xf32>
    %23 = arith.mulf %2, %22 : vector<64x256xf32>
    %24 = vector.broadcast %21 : vector<1x256xf32> to vector<64x256xf32>
    %25 = arith.addf %23, %24 : vector<64x256xf32>
    %26 = vector.extract_strided_slice %25 {offsets = [0, 0], sizes = [64, 128], strides = [1, 1]} : vector<64x256xf32> to vector<64x128xf32>
    %27 = vector.extract_strided_slice %25 {offsets = [0, 128], sizes = [64, 128], strides = [1, 1]} : vector<64x256xf32> to vector<64x128xf32>
    %28 = arith.negf %27 : vector<64x128xf32>
    %29 = math.exp %28 : vector<64x128xf32>
    %cst_12 = arith.constant 1.000000e+00 : f32
    %30 = vector.broadcast %cst_12 : f32 to vector<64x128xf32>
    %31 = arith.addf %30, %29 : vector<64x128xf32>
    %32 = arith.divf %30, %31 : vector<64x128xf32>
    %33 = arith.mulf %26, %32 : vector<64x128xf32>
    %34 = vector.extract_strided_slice %33 {offsets = [0, 0], sizes = [64, 16], strides = [1, 1]} : vector<64x128xf32> to vector<64x16xf32>
    %c0_13 = arith.constant 0 : index
    %c0_14 = arith.constant 0 : index
    %35 = vector.load %arg5[%c0_13, %c0_14] : memref<64x16xf32, #tpu.memory_space<vmem>>, vector<64x16xf32>
    tpu.vector_store %arg5[%c0_13, %c0_14], %34 {strides = array<i32>} : memref<64x16xf32, #tpu.memory_space<vmem>>, vector<64x16xf32>,
    return
  }
  func.func @transform_0(%arg0: i32) -> (i32, i32) {
    %c0_i32 = arith.constant 0 : i32
    %c0_i32_0 = arith.constant 0 : i32
    return %arg0, %c0_i32 : i32, i32
  }
  func.func @transform_1(%arg0: i32) -> (i32, i32) {
    %c0_i32 = arith.constant 0 : i32
    %c0_i32_0 = arith.constant 0 : i32
    %c0_i32_1 = arith.constant 0 : i32
    return %c0_i32, %c0_i32_0 : i32, i32
  }
  func.func @transform_2(%arg0: i32) -> (i32, i32) {
    %c0_i32 = arith.constant 0 : i32
    %c0_i32_0 = arith.constant 0 : i32
    %c0_i32_1 = arith.constant 0 : i32
    return %c0_i32, %c0_i32_0 : i32, i32
  }
  func.func @transform_3(%arg0: i32) -> (i32, i32) {
    %c0_i32 = arith.constant 0 : i32
    %c0_i32_0 = arith.constant 0 : i32
    %c0_i32_1 = arith.constant 0 : i32
    return %c0_i32, %c0_i32_0 : i32, i32
  }
  func.func @transform_4(%arg0: i32) -> (i32, i32) {
    %c0_i32 = arith.constant 0 : i32
    %c0_i32_0 = arith.constant 0 : i32
    return %arg0, %c0_i32 : i32, i32
  }
}

</mosaic_0001>

<bundles_post_ra>
// kernel: tpu_custom_call.1
= control target key start
LH: loop header
LB: loop body
LE: loop exit
PB: predicated region body
PF: predicated region fallthrough
CT: control target
= control target key end

     0   :  { %vm33_vm0 = vcmask 261120   ;;  %vm243_vm6 = vcmask 1040384   ;;  %s940_s1 = inlined_call_operand.vmem [shape: f32[32,256], index: 1, kind: input, shape index: {}]   ;;  %s941_s0 = inlined_call_operand.vmem [shape: f32[64,32], index: 0, kind: input, shape index: {}]   ;;  %s942_s2 = inlined_call_operand.vmem [shape: f32[1,256], index: 2, kind: input, shape index: {}]   ;;  %s943_s3 = inlined_call_operand.vmem [shape: f32[1,256], index: 3, kind: input, shape index: {}]   ;;  %s944_s4 = inlined_call_operand.vmem [shape: f32[64,16], index: 4, kind: output, shape index: {}]  }
   0x1   :  { %v31_v0 = vld [vmem:[%s940_s1 + $0x30] sm:$0xff]  ;;  %v32_v1 = vld [vmem:[%s940_s1 + $0x38] sm:$0xff]  ;;  %v29_v2 = vld [vmem:[%s940_s1 + $0x20] sm:$0xff] }
   0x2   :  { %70 = vmatpush.msra.mxu0 %v31_v0  ;;  %111 = vmatpush.msra.mxu1 %v32_v1  ;;  %v30_v3 = vld [vmem:[%s940_s1 + $0x28] sm:$0xff]  ;;  %v27_v4 = vld [vmem:[%s940_s1 + $0x10] sm:$0xff]  ;;  %v28_v5 = vld [vmem:[%s940_s1 + $0x18] sm:$0xff] }
   0x3   :  { %494 = vmatpush.msra.mxu2 %v31_v0  ;;  %498 = vmatpush.msra.mxu3 %v32_v1  ;;  %v25_v6 = vld [vmem:[%s940_s1] sm:$0xff]  ;;  %v26_v7 = vld [vmem:[%s940_s1 + $0x8] sm:$0xff]  ;;  %v19_v12 = vld [vmem:[%s941_s0 + $0x10] sm:$0xff] }
   0x4   :  { %71 = vmatpush.msra.mxu0 %v29_v2  ;;  %112 = vmatpush.msra.mxu1 %v30_v3  ;;  %v17_v8 = vld [vmem:[%s941_s0] sm:$0xff]  ;;  %v18_v10 = vld [vmem:[%s941_s0 + $0x8] sm:$0xff]  ;;  %v23_v13 = vld [vmem:[%s941_s0 + $0x30] sm:$0xff] }
   0x5   :  { %495 = vmatpush.msra.mxu2 %v29_v2  ;;  %499 = vmatpush.msra.mxu3 %v30_v3  ;;  %v21_v9 = vld [vmem:[%s941_s0 + $0x20] sm:$0xff]  ;;  %v22_v11 = vld [vmem:[%s941_s0 + $0x28] sm:$0xff]  ;;  %v20_v14 = vld [vmem:[%s941_s0 + $0x18] sm:$0xff] }
   0x6   :  { %72 = vmatpush.msra.mxu0 %v27_v4  ;;  %113 = vmatpush.msra.mxu1 %v28_v5  ;;  %v24_v15 = vld [vmem:[%s941_s0 + $0x38] sm:$0xff] }
   0x7   :  { %496 = vmatpush.msra.mxu2 %v27_v4  ;;  %500 = vmatpush.msra.mxu3 %v28_v5 }
   0x8   :  { %73 = vmatpush.msra.mxu0 %v25_v6  ;;  %114 = vmatpush.msra.mxu1 %v26_v7 }
   0x9   :  { %470 = vmatmul.msk.f32.vlgmr.msra.gmra.mxu0 %vm33_vm0, %v17_v8  ;;  %478 = vmatmul.msk.f32.vlgmr.msra.gmra.mxu1 %vm33_vm0, %v17_v8 }
   0xa   :  { %497 = vmatpush.msra.mxu2 %v25_v6  ;;  %501 = vmatpush.msra.mxu3 %v26_v7 }
   0xb   :  { %474 = vmatmul.msk.f32.vlgmr.msra.gmra.mxu2 %vm33_vm0, %v21_v9  ;;  %482 = vmatmul.msk.f32.vlgmr.msra.gmra.mxu3 %vm33_vm0, %v21_v9 }
  0x11   :  { %471 = vmatmul.msk.f32.gmra.mxu0 %vm33_vm0, %v18_v10  ;;  %479 = vmatmul.msk.f32.gmra.mxu1 %vm33_vm0, %v18_v10 }
  0x13   :  { %475 = vmatmul.msk.f32.gmra.mxu2 %vm33_vm0, %v22_v11  ;;  %483 = vmatmul.msk.f32.gmra.mxu3 %vm33_vm0, %v22_v11 }
  0x19   :  { %472 = vmatmul.msk.f32.gmra.mxu0 %vm33_vm0, %v19_v12  ;;  %480 = vmatmul.msk.f32.gmra.mxu1 %vm33_vm0, %v19_v12 }
  0x1b   :  { %476 = vmatmul.msk.f32.gmra.mxu2 %vm33_vm0, %v23_v13  ;;  %484 = vmatmul.msk.f32.gmra.mxu3 %vm33_vm0, %v23_v13 }
  0x21   :  { %473 = vmatmul.msk.f32.gmra.mxu0 %vm33_vm0, %v20_v14  ;;  %481 = vmatmul.msk.f32.gmra.mxu1 %vm33_vm0, %v20_v14 }
  0x23   :  { %477 = vmatmul.msk.f32.gmra.mxu2 %vm33_vm0, %v24_v15  ;;  %485 = vmatmul.msk.f32.gmra.mxu3 %vm33_vm0, %v24_v15 }
  0x86   :  { %v627_v16 = vpop.f32.mrf.mxu0  ;;  %v629_v17 = vpop.f32.mrf.mxu1 }
  0x87   :  { %v168_v28 = vmul.f32 %v627_v16, %v627_v16  ;;  %v169_v31 = vmul.f32 %v629_v17, %v629_v17 }
  0x8e   :  { %v631_v18 = vpop.f32.mrf.mxu0  ;;  %v633_v19 = vpop.f32.mrf.mxu2 }
  0x8f   :  { %v635_v20 = vpop.f32.mrf.mxu1  ;;  %v637_v21 = vpop.f32.mrf.mxu3  ;;  %v170_v26 = vmul.f32 %v631_v18, %v631_v18  ;;  %v142_v29 = vadd.f32 %v631_v18, %v627_v16  ;;  %v176_v48 = vmul.f32 %v633_v19, %v633_v19 }
  0x90   :  { %v171_v27 = vmul.f32 %v635_v20, %v635_v20  ;;  %v155_v32 = vadd.f32 %v635_v20, %v629_v17  ;;  %v177_v51 = vmul.f32 %v637_v21, %v637_v21 }
  0x91   :  { %v184_v34 = vadd.f32 %v170_v26, %v168_v28 }
  0x92   :  { %v197_v36 = vadd.f32 %v171_v27, %v169_v31 }
  0x96   :  { %v639_v22 = vpop.f32.mrf.mxu0  ;;  %v641_v23 = vpop.f32.mrf.mxu2 }
  0x97   :  { %v643_v24 = vpop.f32.mrf.mxu1  ;;  %v645_v25 = vpop.f32.mrf.mxu3  ;;  %v172_v30 = vmul.f32 %v639_v22, %v639_v22  ;;  %v143_v35 = vadd.f32 %v142_v29, %v639_v22  ;;  %v178_v54 = vmul.f32 %v641_v23, %v641_v23 }
  0x98   :  { %v173_v33 = vmul.f32 %v643_v24, %v643_v24  ;;  %v156_v37 = vadd.f32 %v155_v32, %v643_v24  ;;  %v179_v57 = vmul.f32 %v645_v25, %v645_v25 }
  0x99   :  { %v185_v40 = vadd.f32 %v184_v34, %v172_v30 }
  0x9a   :  { %v198_v45 = vadd.f32 %v197_v36, %v173_v33 }
  0x9e   :  { %v665_v38 = vpop.f32.mrf.mxu0  ;;  %v667_v39 = vpop.f32.mrf.mxu2 }
  0x9f   :  { %v144_v41 = vadd.f32 %v143_v35, %v665_v38  ;;  %v174_v42 = vmul.f32 %v665_v38, %v665_v38  ;;  %v672_v43 = vpop.f32.mrf.mxu1  ;;  %v674_v44 = vpop.f32.mrf.mxu3  ;;  %v180_v61 = vmul.f32 %v667_v39, %v667_v39 }
  0xa0   :  { %v157_v46 = vadd.f32 %v156_v37, %v672_v43  ;;  %v175_v47 = vmul.f32 %v672_v43, %v672_v43  ;;  %v181_v0 = vmul.f32 %v674_v44, %v674_v44 }
  0xa1   :  { %v145_v49 = vadd.f32 %v144_v41, %v633_v19  ;;  %v186_v50 = vadd.f32 %v185_v40, %v174_v42 }
  0xa2   :  { %v158_v52 = vadd.f32 %v157_v46, %v637_v21  ;;  %v199_v53 = vadd.f32 %v198_v45, %v175_v47 }
  0xa3   :  { %v187_v55 = vadd.f32 %v186_v50, %v176_v48  ;;  %v146_v56 = vadd.f32 %v145_v49, %v641_v23 }
  0xa4   :  { %v200_v58 = vadd.f32 %v199_v53, %v177_v51  ;;  %v159_v59 = vadd.f32 %v158_v52, %v645_v25 }
  0xa5   :  { %v147_v60 = vadd.f32 %v146_v56, %v667_v39  ;;  %v188_v62 = vadd.f32 %v187_v55, %v178_v54 }
  0xa6   :  { %v160_v63 = vadd.f32 %v159_v59, %v674_v44  ;;  %v201_v1 = vadd.f32 %v200_v58, %v179_v57  ;;  %v697_v2 = vpop.f32.mrf.mxu2 }
  0xa7   :  { %v189_v3 = vadd.f32 %v188_v62, %v180_v61  ;;  %v148_v4 = vadd.f32 %v147_v60, %v697_v2  ;;  %v182_v5 = vmul.f32 %v697_v2, %v697_v2  ;;  %v702_v6 = vpop.f32.mrf.mxu3 }
  0xa8   :  { %v202_v7 = vadd.f32 %v201_v1, %v181_v0  ;;  %v161_v8 = vadd.f32 %v160_v63, %v702_v6  ;;  %v183_v9 = vmul.f32 %v702_v6, %v702_v6 }
  0xa9   :  { %v149_v10 = vrot.slane %v148_v4, 4  ;;  %v190_v11 = vadd.f32 %v189_v3, %v182_v5 }
  0xaa   :  { %v162_v12 = vrot.slane %v161_v8, 4  ;;  %v203_v13 = vadd.f32 %v202_v7, %v183_v9 }
  0xab   :  { %v150_v14 = vadd.f32 %v149_v10, %v148_v4  ;;  %v191_v15 = vrot.slane %v190_v11, 4 }
  0xac   :  { %v163_v26 = vadd.f32 %v162_v12, %v161_v8  ;;  %v204_v27 = vrot.slane %v203_v13, 4 }
  0xad   :  { %v151_v28 = vrot.slane %v150_v14, 2  ;;  %v192_v29 = vadd.f32 %v191_v15, %v190_v11  ;;  %v140_v11 = vld [vmem:[%s942_s2] sm:$0x3] }
  0xae   :  { %v164_v30 = vrot.slane %v163_v26, 2  ;;  %v205_v31 = vadd.f32 %v204_v27, %v203_v13 }
  0xaf   :  { %v152_v32 = vadd.f32 %v151_v28, %v150_v14  ;;  %v193_v33 = vrot.slane %v192_v29, 2 }
  0xb0   :  { %v165_v34 = vadd.f32 %v164_v30, %v163_v26  ;;  %v206_v35 = vrot.slane %v205_v31, 2 }
  0xb1   :  { %v153_v36 = vrot.slane %v152_v32, 1  ;;  %v194_v37 = vadd.f32 %v193_v33, %v192_v29  ;;  %v141_v29 = vld [vmem:[%s943_s3] sm:$0x3] }
  0xb2   :  { %v166_v40 = vrot.slane %v165_v34, 1  ;;  %v207_v41 = vadd.f32 %v206_v35, %v205_v31 }
  0xb3   :  { %v154_v42 = vadd.f32 %v153_v36, %v152_v32  ;;  %v195_v45 = vrot.slane %v194_v37, 1 }
  0xb4   :  { %v167_v46 = vadd.f32 %v166_v40, %v165_v34  ;;  %v208_v47 = vrot.slane %v207_v41, 1 }
  0xb5   :  { %v196_v48 = vadd.f32 %v195_v45, %v194_v37  ;;  %v210_v49 = vmul.f32 0.015625, %v154_v42 }
  0xb6   :  { %v209_v50 = vadd.f32 %v208_v47, %v207_v41  ;;  %v211_v51 = vmul.f32 0.015625, %v167_v46 }
  0xb7   :  { %v212_v52 = vmul.f32 0.015625, %v196_v48  ;;  %v214_v53 = vmul.f32 %v210_v49, %v210_v49 }
  0xb8   :  { %v213_v54 = vmul.f32 0.015625, %v209_v50  ;;  %v215_v55 = vmul.f32 %v211_v51, %v211_v51 }
  0xb9   :  { %v216_v56 = vsub.f32 %v212_v52, %v214_v53 }
  0xba   :  { %v217_v57 = vsub.f32 %v213_v54, %v215_v55 }
  0xbb   :  { %v218_v58 = vadd.f32 1e-05, %v216_v56 }
  0xbc   :  { %v219_v59 = vadd.f32 1e-05, %v217_v57 }
  0xbd   :  { %502 = vrsqrt.f32 %v218_v58  ;;  %vm226_vm5 = vweird.f32 %v218_v58 }
  0xbe   :  { %504 = vrsqrt.f32 %v219_v59  ;;  %vm236_vm3 = vweird.f32 %v219_v59 }
  0xc3   :  { %v503_v60 = vpop.eup %502 }
  0xc4   :  { %v505_v61 = vpop.eup %504  ;;  %v221_v62 = vmul.f32 %v503_v60, %v218_v58  ;;  %vm227_vm2 = vweird.f32 %v503_v60 }
  0xc5   :  { %v231_v63 = vmul.f32 %v505_v61, %v219_v59  ;;  %vm237_vm1 = vweird.f32 %v505_v61  ;;  %vm228_vm7 = vmor %vm226_vm5, %vm227_vm2 }
  0xc6   :  { %v222_v0 = vmul.f32 %v503_v60, %v221_v62  ;;  %vm238_vm4 = vmor %vm236_vm3, %vm237_vm1 }
  0xc7   :  { %v232_v1 = vmul.f32 %v505_v61, %v231_v63 }
  0xc8   :  { %v223_v3 = vmul.f32 0.5, %v222_v0 }
  0xc9   :  { %v233_v4 = vmul.f32 0.5, %v232_v1 }
  0xca   :  { %v224_v5 = vsub.f32 1.5, %v223_v3 }
  0xcb   :  { %v234_v7 = vsub.f32 1.5, %v233_v4 }
  0xcc   :  { %v225_v8 = vmul.f32 %v503_v60, %v224_v5 }
  0xcd   :  { %v235_v9 = vmul.f32 %v505_v61, %v234_v7 }
  0xce   :  { %v229_v13 = vsel %vm228_vm7, %v503_v60, %v225_v8 }
  0xcf   :  { %v239_v10 = vsel %vm238_vm4, %v505_v61, %v235_v9 }
  0xd0   :  { %v242_v12 = vrot.slane %v239_v10, 7 }
  0xd2   :  { %v244_v14 = vsel %vm243_vm6, %v229_v13, %v242_v12 }
  0xd3   :  { %v246_v15 = vmul.f32 %v244_v14, %v140_v11 }
  0xd5   :  { %v710_v26 = vperm.slane %v246_v15, 0  ;;  %v249_v27 = vperm.slane %v246_v15, 1 }
  0xd7   :  { %v253_v28 = vmul.f32 %v249_v27, %v211_v51  ;;  %v252_v30 = vmul.f32 %v710_v26, %v210_v49  ;;  %v261_v34 = vmul.f32 %v249_v27, %v629_v17  ;;  %v263_v35 = vmul.f32 %v249_v27, %v635_v20 }
  0xd8   :  { %v265_v37 = vmul.f32 %v249_v27, %v643_v24  ;;  %v267_v40 = vmul.f32 %v249_v27, %v672_v43  ;;  %v269_v41 = vmul.f32 %v249_v27, %v637_v21  ;;  %v271_v46 = vmul.f32 %v249_v27, %v645_v25 }
  0xd9   :  { %v256_v31 = vrot.slane %v253_v28, 7  ;;  %v273_v50 = vmul.f32 %v249_v27, %v674_v44  ;;  %v275_v17 = vmul.f32 %v249_v27, %v702_v6  ;;  %v260_v0 = vmul.f32 %v710_v26, %v627_v16 }
  0xda   :  { %v262_v4 = vmul.f32 %v710_v26, %v631_v18  ;;  %v264_v5 = vmul.f32 %v710_v26, %v639_v22  ;;  %v266_v7 = vmul.f32 %v710_v26, %v665_v38  ;;  %v268_v9 = vmul.f32 %v710_v26, %v633_v19 }
  0xdb   :  { %v257_v32 = vsel %vm243_vm6, %v252_v30, %v256_v31  ;;  %v270_v16 = vmul.f32 %v710_v26, %v641_v23 }
  0xdc   :  { %v259_v33 = vsub.f32 %v141_v29, %v257_v32 }
  0xde   :  { %v278_v36 = vperm.slane %v259_v33, 1  ;;  %v728_v61 = vperm.slane %v259_v33, 0 }
  0xe0   :  { %v282_v42 = vadd.f32 %v278_v36, %v261_v34  ;;  %v284_v45 = vadd.f32 %v278_v36, %v263_v35  ;;  %v286_v47 = vadd.f32 %v278_v36, %v265_v37  ;;  %v288_v48 = vadd.f32 %v278_v36, %v267_v40 }
  0xe1   :  { %v290_v49 = vadd.f32 %v278_v36, %v269_v41  ;;  %v292_v51 = vadd.f32 %v278_v36, %v271_v46  ;;  %v294_v24 = vadd.f32 %v278_v36, %v273_v50  ;;  %v296_v43 = vadd.f32 %v278_v36, %v275_v17 }
  0xe2   :  { %v486_v20 = vmul.f32 -1.442695, %v282_v42  ;;  %v487_v52 = vmul.f32 -1.442695, %v284_v45  ;;  %v488_v53 = vmul.f32 -1.442695, %v286_v47  ;;  %v753_v18 = vadd.f32 %v728_v61, %v260_v0 }
  0xe3   :  { %v489_v54 = vmul.f32 -1.442695, %v288_v48  ;;  %v490_v21 = vmul.f32 -1.442695, %v290_v49  ;;  %v491_v55 = vmul.f32 -1.442695, %v292_v51  ;;  %v756_v22 = vadd.f32 %v728_v61, %v262_v4 }
  0xe4   :  { %506 = vpow2.f32 %v486_v20  ;;  %v492_v25 = vmul.f32 -1.442695, %v294_v24  ;;  %v493_v56 = vmul.f32 -1.442695, %v296_v43  ;;  %v759_v38 = vadd.f32 %v728_v61, %v264_v5 }
  0xe5   :  { %508 = vpow2.f32 %v487_v52  ;;  %v763_v13 = vadd.f32 %v728_v61, %v266_v7  ;;  %v766_v23 = vadd.f32 %v728_v61, %v268_v9  ;;  %v774_v27 = vadd.f32 %v728_v61, %v270_v16 }
  0xe6   :  { %510 = vpow2.f32 %v488_v53 }
  0xe7   :  { %512 = vpow2.f32 %v489_v54  ;;  %v272_v54 = vmul.f32 %v710_v26, %v667_v39 }
  0xe8   :  { %514 = vpow2.f32 %v490_v21 }
  0xe9   :  { %516 = vpow2.f32 %v491_v55 }
  0xea   :  { %v507_v44 = vpop.eup %506  ;;  %518 = vpow2.f32 %v492_v25 }
  0xeb   :  { %v509_v57 = vpop.eup %508  ;;  %v724_v6 = vadd.f32 1.0, %v507_v44  ;;  %520 = vpow2.f32 %v493_v56 }
  0xec   :  { %v511_v58 = vpop.eup %510  ;;  %v726_v59 = vadd.f32 1.0, %v509_v57 }
  0xed   :  { %v513_v60 = vpop.eup %512  ;;  %v730_v62 = vadd.f32 1.0, %v511_v58  ;;  %522 = vrcp.f32 %v724_v6  ;;  %v340_v10 = vand.u32 2147483648, %v724_v6  ;;  %vm334_vm8 = vweird.f32 %v724_v6 }
  0xee   :  { %v515_v63 = vpop.eup %514  ;;  %v735_v1 = vadd.f32 1.0, %v513_v60  ;;  %524 = vrcp.f32 %v726_v59  ;;  %v355_v12 = vand.u32 2147483648, %v726_v59  ;;  %v338_v28 = vand.u32 2147483647, %v724_v6 }
  0xef   :  { %v517_v3 = vpop.eup %516  ;;  %v744_v8 = vadd.f32 1.0, %v515_v63  ;;  %526 = vrcp.f32 %v730_v62  ;;  %v341_v31 = vor.u32 1.1754944e-38, %v340_v10  ;;  %vm349_vm9 = vweird.f32 %v726_v59 }
  0xf0   :  { %v519_v11 = vpop.eup %518  ;;  %v768_v14 = vadd.f32 1.0, %v517_v3  ;;  %528 = vrcp.f32 %v735_v1  ;;  %v353_v32 = vand.u32 2147483647, %v726_v59  ;;  %v370_v33 = vand.u32 2147483648, %v730_v62 }
  0xf1   :  { %v521_v19 = vpop.eup %520  ;;  %530 = vrcp.f32 %v744_v8  ;;  %v786_v34 = vadd.f32 1.0, %v519_v11  ;;  %v356_v36 = vor.u32 1.1754944e-38, %v355_v12  ;;  %vm364_vm10 = vweird.f32 %v730_v62 }
  0xf2   :  { %v368_v37 = vand.u32 2147483647, %v730_v62  ;;  %v794_v41 = vadd.f32 1.0, %v521_v19  ;;  %v383_v45 = vand.u32 2147483647, %v735_v1  ;;  %532 = vrcp.f32 %v768_v14 }
  0xf3   :  { %v771_v15 = vpop.eup %522  ;;  %vm798_vm11 = vcmp.eq.f32.partialorder %v338_v28, 8.507059e+37  ;;  %vm379_vm12 = vweird.f32 %v735_v1  ;;  %v385_v49 = vand.u32 2147483648, %v735_v1  ;;  %vm808_vm14 = vcmp.eq.f32.partialorder %v353_v32, 8.507059e+37 }
  0xf4   :  { %v779_v29 = vpop.eup %524  ;;  %v330_v30 = vmul.f32 %v771_v15, %v724_v6  ;;  %vm335_vm13 = vweird.f32 %v771_v15  ;;  %v371_v20 = vor.u32 1.1754944e-38, %v370_v33  ;;  %vm394_vm15 = vweird.f32 %v744_v8 }
  0xf5   :  { %v345_v35 = vmul.f32 %v779_v29, %v726_v59  ;;  %v792_v40 = vpop.eup %526  ;;  %vm350_vm0 = vweird.f32 %v779_v29  ;;  %vm815_vm1 = vcmp.eq.f32.partialorder %v368_v37, 8.507059e+37  ;;  %vm821_vm2 = vcmp.eq.f32.partialorder %v383_v45, 8.507059e+37  ;;  %vm834_vm4 = vmor %vm334_vm8, %vm335_vm13 }
  0xf6   :  { %v331_v42 = vsub.f32 1.0, %v330_v30  ;;  %v360_v48 = vmul.f32 %v792_v40, %v730_v62  ;;  %v529_v50 = vpop.eup %528  ;;  %v400_v56 = vand.u32 2147483648, %v744_v8  ;;  %vm365_vm3 = vweird.f32 %v792_v40  ;;  %vm847_vm5 = vmor %vm349_vm9, %vm350_vm0 }
  0xf7   :  { %v346_v47 = vsub.f32 1.0, %v345_v35  ;;  %v531_v52 = vpop.eup %530  ;;  %v375_v43 = vmul.f32 %v529_v50, %v735_v1  ;;  %v386_v0 = vor.u32 1.1754944e-38, %v385_v49  ;;  %v398_v4 = vand.u32 2147483647, %v744_v8  ;;  %vm857_vm7 = vmor %vm364_vm10, %vm365_vm3 }
  0xf8   :  { %v332_v51 = vmul.f32 %v771_v15, %v331_v42  ;;  %v361_v24 = vsub.f32 1.0, %v360_v48  ;;  %v390_v25 = vmul.f32 %v531_v52, %v744_v8  ;;  %v533_v60 = vpop.eup %532  ;;  %534 = vrcp.f32 %v786_v34 }
  0xf9   :  { %v347_v53 = vmul.f32 %v779_v29, %v346_v47  ;;  %v376_v58 = vsub.f32 1.0, %v375_v43  ;;  %vm380_vm6 = vweird.f32 %v529_v50  ;;  %vm395_vm8 = vweird.f32 %v531_v52 }
  0xfa   :  { %v333_v21 = vadd.f32 %v771_v15, %v332_v51  ;;  %v362_v57 = vmul.f32 %v792_v40, %v361_v24  ;;  %v391_v3 = vsub.f32 1.0, %v390_v25  ;;  %v405_v59 = vmul.f32 %v533_v60, %v768_v14  ;;  %vm381_vm9 = vmor %vm379_vm12, %vm380_vm6 }
  0xfb   :  { %v348_v44 = vadd.f32 %v779_v29, %v347_v53  ;;  %v377_v9 = vmul.f32 %v529_v50, %v376_v58  ;;  %v413_v28 = vand.u32 2147483647, %v768_v14  ;;  %v415_v32 = vand.u32 2147483648, %v768_v14  ;;  %vm396_vm10 = vmor %vm394_vm15, %vm395_vm8 }
  0xfc   :  { %v337_v5 = vsel %vm834_vm4, %v771_v15, %v333_v21  ;;  %v363_v7 = vadd.f32 %v792_v40, %v362_v57  ;;  %v392_v11 = vmul.f32 %v531_v52, %v391_v3  ;;  %v401_v15 = vor.u32 1.1754944e-38, %v400_v56 }
  0xfd   :  { %v352_v16 = vsel %vm847_vm5, %v779_v29, %v348_v44  ;;  %v378_v19 = vadd.f32 %v529_v50, %v377_v9  ;;  %v342_v29 = vsel %vm798_vm11, %v341_v31, %v337_v5  ;;  %v406_v30 = vsub.f32 1.0, %v405_v59 }
  0xfe   :  { %v367_v12 = vsel %vm857_vm7, %v792_v40, %v363_v7  ;;  %v393_v62 = vadd.f32 %v531_v52, %v392_v11  ;;  %v357_v33 = vsel %vm808_vm14, %v356_v36, %v352_v16  ;;  %vm410_vm13 = vweird.f32 %v533_v60  ;;  %v535_v37 = vpop.eup %534 }
  0xff   :  { %v382_v35 = vsel %vm381_vm9, %v529_v50, %v378_v19  ;;  %536 = vrcp.f32 %v794_v41  ;;  %v372_v31 = vsel %vm815_vm1, %v371_v20, %v367_v12  ;;  %v407_v42 = vmul.f32 %v533_v60, %v406_v30 }
 0x100   :  { %v387_v1 = vsel %vm821_vm2, %v386_v0, %v382_v35  ;;  %v397_v40 = vsel %vm396_vm10, %v531_v52, %v393_v62  ;;  %vm399_vm11 = vcmp.eq.f32.partialorder %v398_v4, 8.507059e+37  ;;  %vm409_vm12 = vweird.f32 %v768_v14 }
 0x101   :  { %vm881_vm14 = vcmp.eq.f32.partialorder %v413_v28, 8.507059e+37  ;;  %v420_v8 = vmul.f32 %v535_v37, %v786_v34  ;;  %v402_v45 = vsel %vm399_vm11, %v401_v15, %v397_v40  ;;  %v408_v46 = vadd.f32 %v533_v60, %v407_v42  ;;  %vm411_vm15 = vmor %vm409_vm12, %vm410_vm13 }
 0x102   :  { %v449_v47 = vmul.f32 %v342_v29, %v753_v18  ;;  %v450_v48 = vmul.f32 %v357_v33, %v756_v22  ;;  %v416_v49 = vor.u32 1.1754944e-38, %v415_v32  ;;  %v451_v51 = vmul.f32 %v372_v31, %v759_v38 }
 0x103   :  { %v421_v50 = vsub.f32 1.0, %v420_v8  ;;  %v452_v14 = vmul.f32 %v387_v1, %v763_v13  ;;  %v412_v17 = vsel %vm411_vm15, %v533_v60, %v408_v46  ;;  %v428_v20 = vand.u32 2147483647, %v786_v34 }
 0x104   :  { %v430_v52 = vand.u32 2147483648, %v786_v34  ;;  %vm457_vm0 = vcmask 130048   ;;  %v417_v18 = vsel %vm881_vm14, %v416_v49, %v412_v17  ;;  %vm425_vm1 = vweird.f32 %v535_v37 }
 0x105   :  { %v537_v53 = vpop.eup %536  ;;  %v422_v24 = vmul.f32 %v535_v37, %v421_v50  ;;  %v453_v22 = vmul.f32 %v402_v45, %v766_v23  ;;  %458 = vst.msk [vmem:[%s944_s4] sm:$0xff] %vm457_vm0, %v449_v47  ;;  %v454_v13 = vmul.f32 %v417_v18, %v774_v27  ;;  %vm424_vm2 = vweird.f32 %v786_v34 }
 0x106   :  { %v435_v38 = vmul.f32 %v537_v53, %v794_v41  ;;  %459 = vst.msk [vmem:[%s944_s4 + $0x8] sm:$0xff] %vm457_vm0, %v450_v48  ;;  %vm426_vm3 = vmor %vm424_vm2, %vm425_vm1  ;;  %v431_v23 = vor.u32 1.1754944e-38, %v430_v52  ;;  %v293_v27 = vadd.f32 %v728_v61, %v272_v54  ;;  %vm429_vm4 = vcmp.eq.f32.partialorder %v428_v20, 8.507059e+37 }
 0x107   :  { %v423_v43 = vadd.f32 %v535_v37, %v422_v24  ;;  %460 = vst.msk [vmem:[%s944_s4 + $0x10] sm:$0xff] %vm457_vm0, %v451_v51  ;;  %v445_v39 = vand.u32 2147483648, %v794_v41  ;;  %vm440_vm5 = vweird.f32 %v537_v53  ;;  %v443_v56 = vand.u32 2147483647, %v794_v41 }
 0x108   :  { %v436_v21 = vsub.f32 1.0, %v435_v38  ;;  %461 = vst.msk [vmem:[%s944_s4 + $0x18] sm:$0xff] %vm457_vm0, %v452_v14  ;;  %v274_v57 = vmul.f32 %v710_v26, %v697_v2  ;;  %vm439_vm6 = vweird.f32 %v794_v41 }
 0x109   :  { %v427_v55 = vsel %vm426_vm3, %v535_v37, %v423_v43  ;;  %462 = vst.msk [vmem:[%s944_s4 + $0x20] sm:$0xff] %vm457_vm0, %v453_v22  ;;  %vm441_vm7 = vmor %vm439_vm6, %vm440_vm5  ;;  %v446_v60 = vor.u32 1.1754944e-38, %v445_v39  ;;  %vm444_vm8 = vcmp.eq.f32.partialorder %v443_v56, 8.507059e+37 }
 0x10a   :  { %v432_v34 = vsel %vm429_vm4, %v431_v23, %v427_v55  ;;  %v437_v25 = vmul.f32 %v537_v53, %v436_v21  ;;  %463 = vst.msk [vmem:[%s944_s4 + $0x28] sm:$0xff] %vm457_vm0, %v454_v13  ;;  %v295_v63 = vadd.f32 %v728_v61, %v274_v57 }
 0x10b   :  { %v455_v44 = vmul.f32 %v432_v34, %v293_v27 }
 0x10c   :  { %v438_v58 = vadd.f32 %v537_v53, %v437_v25 }
 0x10d   :  { %464 = vst.msk [vmem:[%s944_s4 + $0x30] sm:$0xff] %vm457_vm0, %v455_v44 }
 0x10e   :  { %v442_v0 = vsel %vm441_vm7, %v537_v53, %v438_v58 }
 0x10f   :  { %v447_v3 = vsel %vm444_vm8, %v446_v60, %v442_v0 }
 0x110   :  { %v456_v4 = vmul.f32 %v447_v3, %v295_v63 }
 0x112   :  { %465 = vst.msk [vmem:[%s944_s4 + $0x38] sm:$0xff] %vm457_vm0, %v456_v4 }

</bundles_post_ra>
